<compile_context>
chip_gen: v7x
topology: tpu7x:2x2x1
jax: 0.10.0
libtpu: 0.0.40
codegen_flags: <defaults>
</compile_context>

<pallas_src>
import functools
import math

import jax
import jax.numpy as jnp
from jax.experimental import pallas as pl
from jax.experimental.pallas import tpu as pltpu


_MIB = 1024 * 1024
# Scoped-VMEM limit we explicitly request.  Safe on every generation
# (physical VMEM: v5e/v6e = 128 MiB, v7x = 64 MiB per TensorCore); needed
# because v5e's *default* scoped limit is only 16 MiB.
_VMEM_LIMIT_BYTES = 32 * _MIB
# Budget for kernel-resident (double-buffered) tiles; leaves headroom under
# the 32 MiB limit for compiler-internal scratch.
_FAST_PATH_BUDGET = 24 * _MIB


# ----------------------------------------------------------------------------
# Kernels
# ----------------------------------------------------------------------------
def _make_fast_kernel(cast_bf16):
    """One grid step == `bb` whole per-batch matmuls (everything in VMEM)."""

    def kernel(x1_ref, x2_ref, o_ref):
        a = x1_ref[...]
        b = x2_ref[...]
        if cast_bf16:
            a = a.astype(jnp.bfloat16)
            b = b.astype(jnp.bfloat16)
        # Batched contraction (jnp.dot is not batched); f32 accumulation.
        o_ref[...] = jnp.einsum(
            "bmk,bkn->bmn", a, b, preferred_element_type=jnp.float32
        ).astype(o_ref.dtype)

    return kernel


def _make_tiled_kernel(*, cast_bf16, mask_k, k_total, block_k, use_scratch):
    """Grid = (B, ceil(M/tm), ceil(N/tn), ceil(K/tk)); K (axis 3) is the reduction."""

    def step(x1_ref, x2_ref, acc):
        @pl.when(pl.program_id(3) == 0)
        def _init():
            acc[...] = jnp.zeros_like(acc)

        a = x1_ref[...]
        b = x2_ref[...]
        if cast_bf16:
            a = a.astype(jnp.bfloat16)
            b = b.astype(jnp.bfloat16)
        if mask_k:
            # Zero the out-of-range K slice of BOTH operands (the edge K block
            # reads undefined data, possibly non-finite) so it cannot corrupt
            # the accumulation.  Cheap VPU work, hidden under the MXU.
            k0 = pl.program_id(3) * block_k
            a_k = jax.lax.broadcasted_iota(jnp.int32, a.shape, 1) + k0
            a = jnp.where(a_k < k_total, a, jnp.zeros_like(a))
            b_k = jax.lax.broadcasted_iota(jnp.int32, b.shape, 0) + k0
            b = jnp.where(b_k < k_total, b, jnp.zeros_like(b))

        acc[...] += jnp.dot(a, b, preferred_element_type=jnp.float32)

    if use_scratch:
        # Non-f32 output: keep an f32 accumulator scratch, cast on the last step.
        def kernel(x1_ref, x2_ref, o_ref, acc_ref):
            step(x1_ref, x2_ref, acc_ref)

            @pl.when(pl.program_id(3) == pl.num_programs(3) - 1)
            def _store():
                o_ref[...] = acc_ref[...].astype(o_ref.dtype)

    else:
        # f32 output: accumulate directly into the resident output block
        # (its index_map ignores k) -- saves tm*tn*4 B of VMEM and one
        # read+write of the tile on the final K step.
        def kernel(x1_ref, x2_ref, o_ref):
            step(x1_ref, x2_ref, o_ref)

    return kernel


# ----------------------------------------------------------------------------
# Wrapper
# ----------------------------------------------------------------------------
def _round_up(x, m):
    return ((x + m - 1) // m) * m


def _pick_tile(dim, candidates, granularity, max_waste=0.26):
    """Largest candidate whose edge-block waste is acceptable.

    Never collapses below the smallest candidate just to shave padding
    (halving an output tile doubles HBM re-reads of the other operand).
    Dims smaller than the smallest candidate use the dim rounded up to the
    hardware granularity (8 sublanes / 128 lanes).
    """
    smallest = candidates[-1]
    if dim < smallest:
        return min(smallest, _round_up(dim, granularity))
    for t in candidates:  # descending
        padded = _round_up(dim, t)
        if (padded - dim) / padded <= max_waste:
            return t
    return smallest


def bmm(scores_normalized, keys, *, bf16_operands=True, force_tiled=False):
    """Pallas TPU equivalent of torch.bmm(scores_normalized, keys)."""
    assert scores_normalized.ndim == 3 and keys.ndim == 3, "bmm expects 3-D inputs"
    B, M, K = scores_normalized.shape
    B2, K2, N = keys.shape
    assert B == B2, "batch dimensions must match"
    assert K == K2, "inner dimensions must match"

    x1, x2 = scores_normalized, keys
    out_dtype = jnp.result_type(x1.dtype, x2.dtype)
    # Per-tile bf16 operands + f32 accumulation.  (At DEFAULT precision the MXU
    # already runs f32 operands as bf16-class passes, so this trades no real
    # accuracy for 2x MXU rate; pass bf16_operands=False to keep f32 operands.)
    cast_bf16 = bool(bf16_operands) and jnp.issubdtype(out_dtype, jnp.floating)

    in_itemsize = max(x1.dtype.itemsize, x2.dtype.itemsize)
    out_itemsize = jnp.dtype(out_dtype).itemsize
    cost = pl.CostEstimate(
        flops=2 * B * M * N * K,
        transcendentals=0,
        bytes_accessed=in_itemsize * B * K * (M + N) + out_itemsize * B * M * N,
    )

    # ---- Single-block fast path: whole per-batch matmul fits in VMEM. ----
    per_batch_bytes = (
        2 * in_itemsize * (M * K + K * N) + 2 * out_itemsize * M * N
    )  # double-buffered A/B/out for one batch element
    use_fast = (
        not force_tiled
        and per_batch_bytes <= _FAST_PATH_BUDGET
        # B == 1 with a large M goes to the tiled path so the M axis can feed
        # both TensorCores on v7x; tiny single-batch problems stay here.
        and (B >= 2 or M <= 512)
    )
    if use_fast:
        # Pack `bb` batch elements per grid step when per-batch matmuls are
        # tiny (amortizes grid-step overhead, denser DMAs), but keep >= 2 grid
        # steps when B > 1 so megacore chips (v7x) can split the work, and
        # avoid partial batch blocks by requiring bb | B.
        bb = min(B, max(1, -(-256 // max(M, 1))))                    # bb*M >= 256
        bb = min(bb, max(1, _FAST_PATH_BUDGET // per_batch_bytes))   # VMEM cap
        if B > 1:
            bb = min(bb, -(-B // 2))                                 # >= 2 steps
        while B % bb:
            bb -= 1

        return pl.pallas_call(
            _make_fast_kernel(cast_bf16),
            out_shape=jax.ShapeDtypeStruct((B, M, N), out_dtype),
            grid_spec=pltpu.PrefetchScalarGridSpec(
                num_scalar_prefetch=0,
                grid=(B // bb,),
                in_specs=[
                    pl.BlockSpec((bb, M, K), lambda b: (b, 0, 0)),
                    pl.BlockSpec((bb, K, N), lambda b: (b, 0, 0)),
                ],
                out_specs=pl.BlockSpec((bb, M, N), lambda b: (b, 0, 0)),
            ),
            compiler_params=pltpu.CompilerParams(
                dimension_semantics=("parallel",),
                vmem_limit_bytes=_VMEM_LIMIT_BYTES,
            ),
            cost_estimate=cost,
        )(x1, x2)

    # ---- General tiled path: large tiles, K-last reduction, no pad/slice. ----
    tm = _pick_tile(M, (1024, 512, 256), 8)
    tn = _pick_tile(N, (1024, 512, 256), 128)
    tk = _pick_tile(K, (512, 256), 128)
    mask_k = (K % tk) != 0
    use_scratch = jnp.dtype(out_dtype) != jnp.dtype(jnp.float32)

    # Worst-case resident VMEM at (1024, 1024, 512) f32 tiles:
    # 2*(A 2 MiB + B 2 MiB + out 4 MiB) = 16 MiB (+4 MiB acc if out != f32),
    # comfortably inside the 32 MiB limit requested below on every generation.
    kernel = _make_tiled_kernel(
        cast_bf16=cast_bf16,
        mask_k=mask_k,
        k_total=K,
        block_k=tk,
        use_scratch=use_scratch,
    )
    grid = (B, pl.cdiv(M, tm), pl.cdiv(N, tn), pl.cdiv(K, tk))

    return pl.pallas_call(
        kernel,
        out_shape=jax.ShapeDtypeStruct((B, M, N), out_dtype),
        grid_spec=pltpu.PrefetchScalarGridSpec(
            num_scalar_prefetch=0,
            grid=grid,
            in_specs=[
                pl.BlockSpec((None, tm, tk), lambda b, i, j, k: (b, i, k)),
                pl.BlockSpec((None, tk, tn), lambda b, i, j, k: (b, k, j)),
            ],
            out_specs=pl.BlockSpec((None, tm, tn), lambda b, i, j, k: (b, i, j)),
            scratch_shapes=(
                [pltpu.VMEM((tm, tn), jnp.float32)] if use_scratch else []
            ),
        ),
        compiler_params=pltpu.CompilerParams(
            dimension_semantics=("parallel", "parallel", "parallel", "arbitrary"),
            vmem_limit_bytes=_VMEM_LIMIT_BYTES,
        ),
        cost_estimate=cost,
    )(x1, x2)


# ----------------------------------------------------------------------------
# Self-test
# ----------------------------------------------------------------------------
def _reference(a, b):
    # Reference with the same bf16-rounded operands but exact f32 contraction,
    # so only accumulation-order rounding differs from the kernel.
    a32 = a.astype(jnp.bfloat16).astype(jnp.float32)
    b32 = b.astype(jnp.bfloat16).astype(jnp.float32)
    return jnp.matmul(a32, b32, precision=jax.lax.Precision.HIGHEST)


def _assert_close(got, want, k_dim):
    assert got.shape == want.shape, (got.shape, want.shape)
    atol = 1e-3 * math.sqrt(max(k_dim, 1)) + 1e-3
    max_err = float(jnp.max(jnp.abs(got.astype(jnp.float32) - want)))
    assert jnp.allclose(got.astype(jnp.float32), want, atol=atol, rtol=1e-3), max_err


if __name__ == "__main__":
    key = jax.random.PRNGKey(0)
    ks = jax.random.split(key, 8)

    # 1) GNMT-attention-like shapes (fast path).
    #    scores_normalized: (batch, q_len, k_len), keys: (batch, k_len, hidden)
    B, Tq, Tk, H = 2, 8, 16, 32
    scores = jax.random.normal(ks[0], (B, Tq, Tk), dtype=jnp.float32)
    keys = jax.random.normal(ks[1], (B, Tk, H), dtype=jnp.float32)
    out = bmm(scores, keys)
    jax.block_until_ready(out)
    _assert_close(out, _reference(scores, keys), Tk)

    # 2) Fast path with several batch elements packed per grid step (bb > 1).
    B2 = 8
    a2 = jax.random.normal(ks[2], (B2, Tq, Tk), dtype=jnp.float32)
    b2 = jax.random.normal(ks[3], (B2, Tk, H), dtype=jnp.float32)
    out2 = bmm(a2, b2)
    jax.block_until_ready(out2)
    _assert_close(out2, _reference(a2, b2), Tk)

    # 3) Tiled path, non-tile-aligned M/N/K: exercises partial M/N edge blocks
    #    (masked output writes) and the in-kernel K mask -- no wrapper padding
    #    or output slicing.
    B3, M3, K3, N3 = 2, 200, 384, 136
    a3 = jax.random.normal(ks[4], (B3, M3, K3), dtype=jnp.float32)
    b3 = jax.random.normal(ks[5], (B3, K3, N3), dtype=jnp.float32)
    out3 = bmm(a3, b3, force_tiled=True)
    jax.block_until_ready(out3)
    _assert_close(out3, _reference(a3, b3), K3)

    # 4) Tiled path, aligned shapes, multi-step K reduction accumulating
    #    directly into the resident f32 output block.
    B4, M4, K4, N4 = 1, 256, 1024, 256
    a4 = jax.random.normal(ks[6], (B4, M4, K4), dtype=jnp.float32)
    b4 = jax.random.normal(ks[7], (B4, K4, N4), dtype=jnp.float32)
    out4 = bmm(a4, b4, force_tiled=True)
    jax.block_until_ready(out4)
    _assert_close(out4, _reference(a4, b4), K4)

    print("KERNEL_OK")
</pallas_src>

<mosaic_0001>
module attributes {stable_mosaic.version = 11 : i64} {
  func.func @kernel(%arg0: i32, %arg1: memref<1x8x16xf32, #tpu.memory_space<vmem>>, %arg2: memref<1x16x32xf32, #tpu.memory_space<vmem>>, %arg3: memref<1x8x32xf32, #tpu.memory_space<vmem>>) attributes {dimension_semantics = [#tpu.dimension_semantics<parallel>], iteration_bounds = array<i64: 2>, scalar_prefetch = 0 : i64, scratch_operands = 0 : i64, tpu.core_type = #tpu.core_type<tc>, window_params = [{transform_indices = @transform_0, window_bounds = array<i64: 1, 8, 16>}, {transform_indices = @transform_1, window_bounds = array<i64: 1, 16, 32>}, {transform_indices = @transform_2, window_bounds = array<i64: 1, 8, 32>}]} {
    %c0 = arith.constant 0 : index
    %c0_0 = arith.constant 0 : index
    %c0_1 = arith.constant 0 : index
    %0 = vector.load %arg1[%c0, %c0_0, %c0_1] : memref<1x8x16xf32, #tpu.memory_space<vmem>>, vector<1x8x16xf32>
    %c0_2 = arith.constant 0 : index
    %c0_3 = arith.constant 0 : index
    %c0_4 = arith.constant 0 : index
    %1 = vector.load %arg2[%c0_2, %c0_3, %c0_4] : memref<1x16x32xf32, #tpu.memory_space<vmem>>, vector<1x16x32xf32>
    %2 = arith.truncf %0 : vector<1x8x16xf32> to vector<1x8x16xbf16>
    %3 = arith.truncf %1 : vector<1x16x32xf32> to vector<1x16x32xbf16>
    "tpu.trace_start"() <{level = 10 : i32, message = "bmk,bkn->bmn"}> : () -> ()
    %cst = arith.constant dense<0.000000e+00> : vector<1x8x32xf32>
    %4 = tpu.matmul %2, %3, %cst {dimension_numbers = #tpu.dot_dimension_numbers<[2], [1], [1], [2], [0, 0, 0, 1, 1, 2], [0], [0]>} : vector<1x8x16xbf16>, vector<1x16x32xbf16>, vector<1x8x32xf32> -> vector<1x8x32xf32>
    "tpu.trace_stop"() : () -> ()
    %c0_5 = arith.constant 0 : index
    %c0_6 = arith.constant 0 : index
    %c0_7 = arith.constant 0 : index
    %5 = vector.load %arg3[%c0_5, %c0_6, %c0_7] : memref<1x8x32xf32, #tpu.memory_space<vmem>>, vector<1x8x32xf32>
    tpu.vector_store %arg3[%c0_5, %c0_6, %c0_7], %4 {strides = array<i32>} : memref<1x8x32xf32, #tpu.memory_space<vmem>>, vector<1x8x32xf32>,
    return
  }
  func.func @transform_0(%arg0: i32) -> (i32, i32, i32) {
    %c0_i32 = arith.constant 0 : i32
    %c0_i32_0 = arith.constant 0 : i32
    %c0_i32_1 = arith.constant 0 : i32
    return %arg0, %c0_i32, %c0_i32_0 : i32, i32, i32
  }
  func.func @transform_1(%arg0: i32) -> (i32, i32, i32) {
    %c0_i32 = arith.constant 0 : i32
    %c0_i32_0 = arith.constant 0 : i32
    %c0_i32_1 = arith.constant 0 : i32
    return %arg0, %c0_i32, %c0_i32_0 : i32, i32, i32
  }
  func.func @transform_2(%arg0: i32) -> (i32, i32, i32) {
    %c0_i32 = arith.constant 0 : i32
    %c0_i32_0 = arith.constant 0 : i32
    %c0_i32_1 = arith.constant 0 : i32
    return %arg0, %c0_i32, %c0_i32_0 : i32, i32, i32
  }
}

</mosaic_0001>

<bundles_post_ra>
// kernel: tpu_custom_call.1
= control target key start
LH: loop header
LB: loop body
LE: loop exit
PB: predicated region body
PF: predicated region fallthrough
CT: control target
= control target key end

     0   :  { %7 = vsyncpa [#allocation3], 0  ;;  %s805_s0 = inlined_call_operand.hbm [shape: f32[2,8,16], index: 0, kind: input, shape index: {}]   ;;  %s806_s1 = inlined_call_operand.hbm [shape: f32[2,16,32], index: 1, kind: input, shape index: {}]   ;;  %s807_s2 = inlined_call_operand.hbm [shape: f32[2,8,32], index: 2, kind: output, shape index: {}]  }
   0x1   :  { %9 = vsyncpa [#allocation3 + $0x1], 0 }
   0x2   :  { %10 = vsyncpa [#allocation6], 0 }
   0x3   :  { %12 = vsyncpa [#allocation6 + $0x1], 0 }
   0x4   :  { %13 = vsyncpa [#allocation4], 0 }
   0x5   :  { %15 = vsyncpa [#allocation4 + $0x1], 0  ;;  %s593_s9 = smov 0   ;;  %s595_s10 = smov 0  }
   0x6   :  { %s597_s11 = smov 0   ;;  %s599_s12 = smov 0  }
   0x7 LB: > { %s614_s13 = sadd.s32 4294967295, %s569_s12   ;;  %s358_s14 = sadd.s32 4294967294, %s569_s12   ;;  %s569_s12 = sphi %s599_s12, %s825_s12   ;;  %s565_s11 = sphi %s597_s11, %s824_s11   ;;  %s561_s10 = sphi %s595_s10, %s823_s10   ;;  %s557_s9 = sphi %s593_s9, %s822_s9  }
   0x8   : > { %s618_s15 = sadd.s32 1, %s569_s12   ;;  %s28_s16 = sadd.s32 1, %s565_s11 }
   0x9   : > { %s25_s17 = ssub.s32 %s569_s12, %s618_s15  ;;  %p35_p0 = scmp.ne.s32.totalorder %s565_s11, %s561_s10 }
   0xa   : > { %p26_p1 = scmp.eq.s32.totalorder %s25_s17, 0  ;;  %p36_p2 = scmp.eq.s32.totalorder %s569_s12, 0 }
   0xb   : > { %p41_p3 = scmp.ne.s32.totalorder %s561_s10, %s557_s9  ;;  %p42_p4 = scmp.eq.s32.totalorder %s614_s13, 0 }
   0xc   : > { %s630_s18 = scalar_select %p26_p1, %s565_s11, %s28_s16  }
   0xd   : > { %p632_p5 = por %p36_p2, %p35_p0  ;;  %p636_p6 = por %p42_p4, %p41_p3 }
   0xe   : > { %p91_p7 = scmp.eq.s32.totalorder %s614_s13, 1  ;;  %p97_p8 = scmp.eq.s32.totalorder %s358_s14, 1 }
   0xf   : > { %s811_s20 = scalar_select %p636_p6, 1, 0 }
  0x10   : > { %p401_p10 = scmp.lt.s32.totalorder %s569_s12, 2  ;;  %p643_p11 = por %p91_p7, %p35_p0 }
  0x11   : > { %p647_p12 = por %p97_p8, %p41_p3  ;;  %s652_s23 = sand.u32 1, %s565_s11  }
  0x12   : > { %s812_s21 = scalar_select %p643_p11, 1, 0 }
  0x13   : > { %s813_s22 = scalar_select %p647_p12, 1, 0 }
  0x14   : > { %s362_s24 = sshll.u32 %s569_s12, 7  ;;  %s361_s25 = sshll.u32 %s652_s23, 3 }
  0x15   : > { %s659_s28 = scalar_lea.hbm %s805_s0, %s362_s24  ;;  %s121_s29 = scalar_lea.vmem [#allocation2], %s361_s25 }
  0x16   : > { %s128_s30 = sshll.u32 %s121_s29, 4  ;;  %p663_p13 = pnand %p401_p10, %p632_p5  ;;  %s667_s30 = int_to_ptr.vmem [resolvable:$true] %s128_s30 }
  0x17   : > { %s118_s4 = scalar_lea.sflag [#allocation3], %s652_s23  ;;  %s439_s5 = scalar_lea.hbm %s659_s28, 128 }
  0x18   : > { %p440_p2 = scmp.ne.s32.totalorder %s659_s28, %s439_s5  ;;  %p441_p3 = pneg %p663_p13 }
  0x19   : > { %s444_s8 = scalar_lea.hbm %s805_s0, 256  ;;  %p445_p5 = scmp.lt.u32.totalorder %s659_s28, %s805_s0 }
  0x1a   : > { %p442_p4 = pnand %p441_p3, %p440_p2  ;;  %p446_p8 = scmp.lt.u32.totalorder %s444_s8, %s439_s5 }
  0x1b   : > { %p448_p9 = scmp.lt.u32.totalorder %s439_s5, %s659_s28 }
  0x1c   : > { %p443_p7 = pneg %p442_p4  ;;  %p447_p10 = por %p446_p8, %p445_p5 }
  0x1e   : > { %p449_p0 = por %p448_p9, %p447_p10 }
  0x20   : > { %p450_p1 = pnand %p449_p0, %p443_p7 }
  0x22   : > { %453 = shalt.err (!%p450_p1)
}
  0x23   : > { %s454_s17 = scalar_lea.vmem %s667_s30, 128  ;;  %s571_s19 = smov [#allocation2]  }
  0x24   : > { %p455_p2 = scmp.ne.s32.totalorder %s667_s30, %s454_s17  ;;  %s459_s24 = sshll.u32 %s571_s19, 4  ;;  %s460_s24 = int_to_ptr.vmem [resolvable:$false] %s459_s24 }
  0x25   : > { %s461_s25 = scalar_lea.vmem %s460_s24, 256  ;;  %p462_p11 = scmp.lt.s32.totalorder %s667_s30, %s460_s24 }
  0x26   : > { %p457_p4 = pnand %p455_p2, %p441_p3  ;;  %p463_p5 = scmp.lt.s32.totalorder %s461_s25, %s454_s17 }
  0x28   : > { %p458_p12 = pneg %p457_p4  ;;  %p464_p8 = por %p463_p5, %p462_p11 }
  0x2a   : > { %p465_p9 = pnand %p464_p8, %p458_p12 }
  0x2c   : > { %468 = shalt.err (!%p465_p9)
}
  0x2d   : > { %393 = dma.hbm_to_vmem [thread:$0]  (!%p663_p13), %s659_s28, 128, %s667_s30, %s118_s4  }
  0x2e   : > { %p815_p0 = scmp.lt.s32.totalorder %s569_s12, 3  ;;  %p816_p1 = scmp.ge.s32.totalorder %s569_s12, 1 }
  0x2f   : > { %s363_s27 = sshll.u32 %s652_s23, 4  ;;  %s375_s29 = sshll.u32 %s569_s12, 8 }
  0x30   : > { %p701_p7 = pnand %p816_p1, %p815_p0  ;;  %s710_s7 = scalar_lea.hbm %s806_s1, %s375_s29 }
  0x31   : > { %s139_s8 = scalar_lea.vmem [#allocation5], %s363_s27  ;;  %s136_s28 = scalar_lea.sflag [#allocation6], %s652_s23 }
  0x32   : > { %s146_s14 = sshll.u32 %s139_s8, 4  ;;  %s469_s30 = scalar_lea.hbm %s710_s7, 256  ;;  %s712_s14 = int_to_ptr.vmem [resolvable:$true] %s146_s14 }
  0x33   : > { %p470_p11 = scmp.ne.s32.totalorder %s710_s7, %s469_s30  ;;  %s474_s17 = scalar_lea.hbm %s806_s1, 512 }
  0x34   : > { %p475_p2 = scmp.lt.u32.totalorder %s710_s7, %s806_s1  ;;  %p476_p4 = scmp.lt.u32.totalorder %s474_s17, %s469_s30 }
  0x35   : > { %p472_p12 = pnand %p470_p11, %p441_p3  ;;  %p478_p8 = scmp.lt.u32.totalorder %s469_s30, %s710_s7 }
  0x36   : > { %p477_p5 = por %p476_p4, %p475_p2 }
  0x37   : > { %p473_p10 = pneg %p472_p12 }
  0x38   : > { %p479_p9 = por %p478_p8, %p477_p5 }
  0x3a   : > { %p480_p0 = pnand %p479_p9, %p473_p10 }
  0x3c   : > { %483 = shalt.err (!%p480_p0)
}
  0x3d   : > { %s484_s25 = scalar_lea.vmem %s712_s14, 256  ;;  %s572_s27 = smov [#allocation5]  }
  0x3e   : > { %p485_p1 = scmp.ne.s32.totalorder %s712_s14, %s484_s25  ;;  %s489_s29 = sshll.u32 %s572_s27, 4  ;;  %s490_s29 = int_to_ptr.vmem [resolvable:$false] %s489_s29 }
  0x3f   : > { %s491_s5 = scalar_lea.vmem %s490_s29, 512  ;;  %p492_p6 = scmp.lt.s32.totalorder %s712_s14, %s490_s29 }
  0x40   : > { %p487_p11 = pnand %p485_p1, %p441_p3  ;;  %p493_p2 = scmp.lt.s32.totalorder %s491_s5, %s484_s25 }
  0x42   : > { %p488_p12 = pneg %p487_p11  ;;  %p494_p4 = por %p493_p2, %p492_p6 }
  0x44   : > { %p495_p5 = pnand %p494_p4, %p488_p12 }
  0x46   : > { %498 = shalt.err (!%p495_p5)
}
  0x47   : > { %s573_s6 = smov 128   ;;  %s574_s8 = smov 8  }
  0x48   : > { %396 = dma.hbm_to_vmem [thread:$0]  (!%p663_p13), %s710_s7, 256, %s712_s14, %s136_s28, %s573_s6, %s573_s6, %s574_s8  }
  0x49   : > { %158 = sbr.rel (%p701_p7) target bundleno = 317 (0x13d), region = 28  ;;  %s743_s30 = sand.u32 (!%p701_p7), 1, %s561_s10  }
  0x4a   : > { %s367_s4 = sshll.u32 (!%p701_p7), %s743_s30, 3  ;;  %s161_s16 = scalar_lea.sflag (!%p701_p7), [#allocation3], %s743_s30 }
  0x4b   : > { %s164_s17 = scalar_lea.vmem (!%p701_p7), [#allocation2], %s367_s4  ;;  %p818_p6 = scmp.ne.s32.totalorder (!%p701_p7), %s811_s20, 0 }
  0x50   : > { %544 = dma.done.wait (%p818_p6), %s161_s16, 128  }
  0x51   : > { %546 = vsyncadd (%p818_p6), %s161_s16, 4294967168  ;;  %s368_s23 = sshll.u32 %s743_s30, 4  ;;  %s170_s3 = scalar_lea.sflag [#allocation6], %s743_s30 }
  0x52   : > { %s173_s26 = scalar_lea.vmem [#allocation5], %s368_s23 }
  0x53   : > { %548 = dma.done.wait (%p818_p6), %s170_s3, 256  }
  0x54   : > { %550 = vsyncadd (%p818_p6), %s170_s3, 4294967040  ;;  %v575_v0 = vmov 0.0   ;;  %vm576_vm0 = vmmov 0   ;;  %v201_v1 = vld [vmem:[%s173_s26] sm:$0xff]  ;;  %v202_v2 = vld [vmem:[%s173_s26 + $0x8] sm:$0xff]  ;;  %vm205_vm1 = vcmask 130048  }
  0x55   : > { %378 = vmatprep.subr.bf16.mxu0 %v575_v0  ;;  %380 = vmatprep.mubr.msk.bf16.mxu0 %vm576_vm0, %v575_v0  ;;  %v200_v3 = vld [vmem:[%s164_s17] sm:$0xff]  ;;  %v204_v4 = vpack.c.bf16 %v202_v2, %v201_v1  ;;  %s372_s7 = sshll.u32 %s614_s13, 7  ;;  %s198_s14 = scalar_lea.vmem [#allocation7], %s367_s4  ;;  %vm249_vm2 = vcmask 261120  }
  0x56   : > { %v203_v5 = vpack.c.bf16 %v200_v3, %v200_v3  ;;  %s265_s28 = sshll.u32 %s198_s14, 4  ;;  %s761_s24 = scalar_lea.hbm %s807_s2, %s372_s7  ;;  %s763_s28 = int_to_ptr.vmem [resolvable:$true] %s265_s28 }
  0x57   : > { %379 = vmatpush3.bf16.msra.mxu0 %v204_v4  ;;  %s252_s25 = scalar_lea.sflag [#allocation4], %s743_s30  ;;  %s499_s27 = scalar_lea.vmem %s763_s28, 128 }
  0x58   : > { %p500_p13 = scmp.ne.s32.totalorder %s763_s28, %s499_s27  ;;  %p819_p3 = scmp.ne.s32.totalorder %s812_s21, 0 }
  0x59   : > { %s577_s13 = smov [#allocation7]  }
  0x5a   : > { %381 = vmatmul.mubr.msk.bf16.vlgmr.msra.gmra.mrb[0].mxu0 %vm205_vm1, %v203_v5  ;;  %p501_p7 = pnand %p500_p13, %p819_p3  ;;  %s503_s29 = sshll.u32 %s577_s13, 4  ;;  %s504_s29 = int_to_ptr.vmem [resolvable:$false] %s503_s29 }
  0x5b   : > { %s505_s5 = scalar_lea.vmem %s504_s29, 256  ;;  %p506_p8 = scmp.lt.s32.totalorder %s763_s28, %s504_s29 }
  0x5c   : > { %p502_p10 = pneg %p501_p7  ;;  %p507_p9 = scmp.lt.s32.totalorder %s505_s5, %s499_s27 }
  0x5e   : > { %p508_p0 = por %p507_p9, %p506_p8 }
  0x60   : > { %p509_p1 = pnand %p508_p0, %p502_p10 }
 0x12d   : > { %v243_v6 = vpop.f32.mrb[0].mxu0 }
 0x12e   : > { %250 = vst.msk [vmem:[%s198_s14] sm:$0xff] %vm249_vm2, %v243_v6  ;;  %v382_v7 = vpop.f32.mrb[1].mxu0 }
 0x12f   : > { %v246_v8 = vpop.f32.mrb[2].mxu0 }
 0x130   : > { %512 = shalt.err (!%p509_p1)
}
 0x131   : > { %s513_s6 = scalar_lea.hbm %s761_s24, 128  ;;  %s517_s4 = scalar_lea.hbm %s807_s2, 256 }
 0x132   : > { %p514_p11 = scmp.ne.s32.totalorder %s761_s24, %s513_s6  ;;  %p518_p4 = scmp.lt.u32.totalorder %s761_s24, %s807_s2 }
 0x133   : > { %p519_p5 = scmp.lt.u32.totalorder %s517_s4, %s513_s6  ;;  %p521_p13 = scmp.lt.u32.totalorder %s513_s6, %s761_s24 }
 0x134   : > { %p515_p12 = pnand %p514_p11, %p819_p3 }
 0x135   : > { %p520_p6 = por %p519_p5, %p518_p4 }
 0x136   : > { %p516_p2 = pneg %p515_p12 }
 0x137   : > { %p522_p7 = por %p521_p13, %p520_p6 }
 0x139   : > { %p523_p10 = pnand %p522_p7, %p516_p2 }
 0x13b   : > { %526 = shalt.err (!%p523_p10)
}
 0x13c   : > { %388 = dma.vmem_to_hbm [thread:$0]  (%p819_p3), %s763_s28, 128, %s761_s24, %s252_s25   ;;  %v383_v9 = vpop.f32.mrb[3].mxu0 }
 0x13d PF: > { %s277_s23 = sand.u32 1, %s557_s9   ;;  %p820_p8 = scmp.ne.s32.totalorder %s813_s22, 0 }
 0x13e   : > { %p821_p9 = scmp.ge.s32.totalorder %s569_s12, 2  ;;  %s278_s3 = scalar_lea.sflag [#allocation4], %s277_s23 }
 0x140   : > { %p398_p0 = pnand %p821_p9, %p820_p8 }
 0x142   : > { %552 = dma.done.wait (!%p398_p0), %s278_s3, 128  }
 0x143   : > { %554 = vsyncadd (!%p398_p0), %s278_s3, 4294967168  ;;  %p18_p1 = scmp.ge.s32.totalorder %s618_s15, 4   ;;  %s822_s9 = smov %s561_s10 }
 0x144   : > { %s823_s10 = smov %s565_s11  ;;  %s824_s11 = smov %s630_s18 }
 0x145   : > { %s825_s12 = smov %s618_s15  ;;  %20 = sbr.rel (!%p18_p1) target bundleno = 7 (0x7), region = 86 }
 0x14c   :  { %283 = vsyncpa [#allocation3], 1 }
 0x14d   :  { %285 = vsyncpa [#allocation3 + $0x1], 1 }
 0x14e   :  { %286 = vsyncpa [#allocation6], 1 }
 0x14f   :  { %288 = vsyncpa [#allocation6 + $0x1], 1 }
 0x150   :  { %289 = vsyncpa [#allocation4], 1 }
 0x151   :  { %291 = vsyncpa [#allocation4 + $0x1], 1 }

</bundles_post_ra>
